<compile_context>
chip_gen: v7x
topology: tpu7x:2x2x1
jax: 0.10.0
libtpu: 0.0.40
codegen_flags: <defaults>
</compile_context>

<pallas_src>
import jax
import jax.numpy as jnp
from jax import lax
from jax.experimental import pallas as pl
from jax.experimental.pallas import tpu as pltpu


def _mask_combine_kernel(idx_ref, feat_ref, vec_ref, out_ref):
    # idx_ref : [tile, 1] int32  (batch index per point)
    # feat_ref: [tile, C]
    # vec_ref : [B, C]           (full, resident every grid step)
    # out_ref : [tile, 2*C]
    tile, C = feat_ref.shape
    B = vec_ref.shape[0]

    # Left half: pure passthrough copy of the point features.
    out_ref[:, 0:C] = feat_ref[...]

    idx = idx_ref[...]          # [tile, 1]
    vec = vec_ref[...]          # [B, C]

    if B <= 8:
        # Small B: B broadcast VPU selects. No [tile,B] one-hot temporary, no
        # MXU involvement (works for integer dtypes on v7x as well).
        gathered = jnp.zeros((tile, C), dtype=vec.dtype)
        for b in range(B):
            gathered = jnp.where(idx == b, vec[b:b + 1, :], gathered)
        out_ref[:, C:2 * C] = gathered.astype(out_ref.dtype)
    else:
        # Larger B: one-hot matmul gather (MXU). Upcast to f32 for integer
        # dtypes (exact for the gather, avoids v7x's lack of an integer MXU).
        batch_iota = lax.broadcasted_iota(jnp.int32, (tile, B), 1)
        onehot = (idx == batch_iota)
        if jnp.issubdtype(vec.dtype, jnp.floating):
            oh, v = onehot.astype(vec.dtype), vec
        else:
            oh, v = onehot.astype(jnp.float32), vec.astype(jnp.float32)
        gathered = jnp.dot(oh, v, preferred_element_type=jnp.float32)
        out_ref[:, C:2 * C] = gathered.astype(out_ref.dtype)


def _round_up(x, m):
    return (x + m - 1) // m * m


def global_mask_combine(features, vecter, point_idx, *, tile=None):
    """features: [N, C], vecter: [B, C], point_idx: [N] int -> [N, 2*C].

    `tile` (rows per grid step) is auto-sized when None: large enough that one
    step moves ~4 MiB of HBM traffic, clamped to the generation-specific VMEM
    budget and rounded to the sublane multiple.  N need not be a tile multiple
    (ragged last block is masked by Pallas).
    """
    assert features.shape[-1] == vecter.shape[-1]
    N, C = features.shape
    B = vecter.shape[0]
    itemsize = jnp.dtype(features.dtype).itemsize

    # Sublane packing multiple: f32 -> 8, bf16 -> 16, int8/fp8 -> 32.
    sub = 8 * max(1, 4 // itemsize)
    lane = 128

    # HBM traffic per row (read C, write 2C, read 4B of idx).
    hbm_per_row = 3 * C * itemsize + 4
    # VMEM bytes per row per buffer, using *padded* layouts: channel dims pad
    # to 128 lanes, the [tile,1] int32 idx block is lane-padded to 128 lanes.
    c_pad = _round_up(C, lane)
    out_pad = _round_up(2 * C, lane)
    vmem_per_row = (c_pad + out_pad) * itemsize + lane * 4

    # Generation-aware VMEM budget (v7x: 64 MiB -> ~48 MiB usable; v5e/v6e:
    # 128 MiB -> ~112 MiB usable).
    try:
        vmem_cap = int(getattr(pltpu.get_tpu_info(), "vmem_capacity_bytes", 64 << 20))
    except Exception:  # pragma: no cover - conservative fallback
        vmem_cap = 64 << 20
    headroom = 16 << 20
    vec_resident = 2 * _round_up(max(B, 1), sub) * c_pad * itemsize
    budget = max(vmem_cap - headroom - vec_resident, 4 << 20)

    tile_max = max(sub, (budget // (2 * vmem_per_row)) // sub * sub)
    tile_target = _round_up(max(pl.cdiv(4 << 20, hbm_per_row), sub), sub)
    if tile is None:
        tile_eff = min(tile_target, tile_max)
    else:
        tile_eff = min(_round_up(max(int(tile), sub), sub), tile_max)
    tile_eff = max(sub, min(tile_eff, _round_up(N, sub)))

    num_tiles = pl.cdiv(N, tile_eff)

    idx2d = point_idx.reshape(N, 1).astype(jnp.int32)

    # VMEM budget: double-buffered idx/feat/out tiles + resident global vectors.
    vmem_need = 2 * tile_eff * vmem_per_row + vec_resident + (2 << 20)
    vmem_limit = int(min(max(vmem_need, 8 << 20), vmem_cap))

    # Memory-bound roofline hint: read N*C feat + B*C vec + N idx, write 2*N*C.
    cost = pl.CostEstimate(
        flops=N * B * C,            # select/one-hot work, negligible either way
        transcendentals=0,
        bytes_accessed=3 * N * C * itemsize + B * C * itemsize + 4 * N,
    )

    return pl.pallas_call(
        _mask_combine_kernel,
        out_shape=jax.ShapeDtypeStruct((N, 2 * C), features.dtype),
        grid_spec=pl.GridSpec(
            grid=(num_tiles,),
            in_specs=[
                # Last dims equal the full array extents (1, C, C, 2C), which
                # keeps these block shapes legal regardless of the (8,128)
                # divisibility rule; row dim is a sublane multiple.
                pl.BlockSpec((tile_eff, 1), lambda i: (i, 0)),   # point_idx tile
                pl.BlockSpec((tile_eff, C), lambda i: (i, 0)),   # features tile
                pl.BlockSpec((B, C), lambda i: (0, 0)),          # full global vectors
            ],
            out_specs=pl.BlockSpec((tile_eff, 2 * C), lambda i: (i, 0)),
        ),
        compiler_params=pltpu.CompilerParams(
            dimension_semantics=("parallel",),   # rows shard across TCs on v7x
            vmem_limit_bytes=vmem_limit,
        ),
        cost_estimate=cost,
    )(idx2d, features, vecter)


if __name__ == "__main__":
    # Small, deterministic synthetic sparse tensor:
    #   N = 200 active sites, C = 128 channels (lane-dense output stores),
    #   B = 2 batch elements.
    # (dimension=3 in the module only affects spatial_locations width; the
    #  last column — the batch index — is all the forward pass uses.)
    N, C, B = 200, 128, 2
    key = jax.random.PRNGKey(0)
    kf, kv, ki = jax.random.split(key, 3)

    features = jax.random.normal(kf, (N, C), dtype=jnp.float32)
    vecter = jax.random.normal(kv, (B, C), dtype=jnp.float32)
    point_idx = jax.random.randint(ki, (N,), 0, B, dtype=jnp.int32)

    # Reference: plain-JAX equivalent of the PyTorch forward.
    ref = jnp.concatenate([features, vecter[point_idx]], axis=1)

    # Auto-sized tile (single block here).
    out = jax.block_until_ready(global_mask_combine(features, vecter, point_idx))
    assert out.shape == (N, 2 * C)
    assert jnp.allclose(out, ref, atol=1e-6), "mismatch vs reference (auto tile)"

    # Small forced tile to exercise the multi-step grid with a ragged last block
    # (no wrapper padding / output slicing involved).
    out2 = jax.block_until_ready(global_mask_combine(features, vecter, point_idx, tile=64))
    assert jnp.allclose(out2, ref, atol=1e-6), "mismatch vs reference (tile=64)"

    # TODO(synk): SparseConvNet metadata / spatial_size passthrough has no
    # tensor compute — only the features concat is implemented here.
    print("KERNEL_OK")
</pallas_src>

<mosaic_0001>
module attributes {stable_mosaic.version = 11 : i64} {
  func.func @_mask_combine_kernel(%arg0: i32, %arg1: memref<200x1xi32, #tpu.memory_space<vmem>>, %arg2: memref<200x128xf32, #tpu.memory_space<vmem>>, %arg3: memref<2x128xf32, #tpu.memory_space<vmem>>, %arg4: memref<200x256xf32, #tpu.memory_space<vmem>>) attributes {dimension_semantics = [#tpu.dimension_semantics<parallel>], iteration_bounds = array<i64: 1>, scalar_prefetch = 0 : i64, scratch_operands = 0 : i64, tpu.core_type = #tpu.core_type<tc>, window_params = [{transform_indices = @transform_0, window_bounds = array<i64: 200, 1>}, {transform_indices = @transform_1, window_bounds = array<i64: 200, 128>}, {pipeline_mode = #tpu.pipeline_mode<synchronous>, transform_indices = @transform_2, window_bounds = array<i64: 2, 128>}, {transform_indices = @transform_3, window_bounds = array<i64: 200, 256>}]} {
    %c0 = arith.constant 0 : index
    %c0_0 = arith.constant 0 : index
    %0 = vector.load %arg2[%c0, %c0_0] : memref<200x128xf32, #tpu.memory_space<vmem>>, vector<200x128xf32>
    %c0_1 = arith.constant 0 : index
    %c0_2 = arith.constant 0 : index
    %1 = vector.load %arg4[%c0_1, %c0_2] : memref<200x256xf32, #tpu.memory_space<vmem>>, vector<200x128xf32>
    tpu.vector_store %arg4[%c0_1, %c0_2], %0 {strides = array<i32>} : memref<200x256xf32, #tpu.memory_space<vmem>>, vector<200x128xf32>,
    %c0_3 = arith.constant 0 : index
    %c0_4 = arith.constant 0 : index
    %2 = vector.load %arg1[%c0_3, %c0_4] : memref<200x1xi32, #tpu.memory_space<vmem>>, vector<200x1xi32>
    %c0_5 = arith.constant 0 : index
    %c0_6 = arith.constant 0 : index
    %3 = vector.load %arg3[%c0_5, %c0_6] : memref<2x128xf32, #tpu.memory_space<vmem>>, vector<2x128xf32>
    %cst = arith.constant 0.000000e+00 : f32
    %4 = vector.broadcast %cst : f32 to vector<200x128xf32>
    %c0_i32 = arith.constant 0 : i32
    %5 = vector.broadcast %c0_i32 : i32 to vector<200x1xi32>
    %6 = arith.cmpi eq, %2, %5 : vector<200x1xi32>
    %7 = vector.extract_strided_slice %3 {offsets = [0, 0], sizes = [1, 128], strides = [1, 1]} : vector<2x128xf32> to vector<1x128xf32>
    %8 = vector.shape_cast %6 : vector<200x1xi1> to vector<200x1xi1>
    %9 = vector.broadcast %8 : vector<200x1xi1> to vector<200x128xi1>
    %10 = vector.shape_cast %7 : vector<1x128xf32> to vector<1x128xf32>
    %11 = vector.broadcast %10 : vector<1x128xf32> to vector<200x128xf32>
    %12 = arith.select %9, %11, %4 : vector<200x128xi1>, vector<200x128xf32>
    %c1_i32 = arith.constant 1 : i32
    %13 = vector.broadcast %c1_i32 : i32 to vector<200x1xi32>
    %14 = arith.cmpi eq, %2, %13 : vector<200x1xi32>
    %15 = vector.extract_strided_slice %3 {offsets = [1, 0], sizes = [1, 128], strides = [1, 1]} : vector<2x128xf32> to vector<1x128xf32>
    %16 = vector.shape_cast %14 : vector<200x1xi1> to vector<200x1xi1>
    %17 = vector.broadcast %16 : vector<200x1xi1> to vector<200x128xi1>
    %18 = vector.shape_cast %15 : vector<1x128xf32> to vector<1x128xf32>
    %19 = vector.broadcast %18 : vector<1x128xf32> to vector<200x128xf32>
    %20 = arith.select %17, %19, %12 : vector<200x128xi1>, vector<200x128xf32>
    %c0_7 = arith.constant 0 : index
    %c128 = arith.constant 128 : index
    %21 = vector.load %arg4[%c0_7, %c128] : memref<200x256xf32, #tpu.memory_space<vmem>>, vector<200x128xf32>
    tpu.vector_store %arg4[%c0_7, %c128], %20 {strides = array<i32>} : memref<200x256xf32, #tpu.memory_space<vmem>>, vector<200x128xf32>,
    return
  }
  func.func @transform_0(%arg0: i32) -> (i32, i32) {
    %c0_i32 = arith.constant 0 : i32
    %c0_i32_0 = arith.constant 0 : i32
    return %arg0, %c0_i32 : i32, i32
  }
  func.func @transform_1(%arg0: i32) -> (i32, i32) {
    %c0_i32 = arith.constant 0 : i32
    %c0_i32_0 = arith.constant 0 : i32
    return %arg0, %c0_i32 : i32, i32
  }
  func.func @transform_2(%arg0: i32) -> (i32, i32) {
    %c0_i32 = arith.constant 0 : i32
    %c0_i32_0 = arith.constant 0 : i32
    %c0_i32_1 = arith.constant 0 : i32
    return %c0_i32, %c0_i32_0 : i32, i32
  }
  func.func @transform_3(%arg0: i32) -> (i32, i32) {
    %c0_i32 = arith.constant 0 : i32
    %c0_i32_0 = arith.constant 0 : i32
    return %arg0, %c0_i32 : i32, i32
  }
}

</mosaic_0001>

<bundles_post_ra>
// kernel: tpu_custom_call.1
= control target key start
LH: loop header
LB: loop body
LE: loop exit
PB: predicated region body
PF: predicated region fallthrough
CT: control target
= control target key end

     0   :  { %v520_v3 = vmov 0   ;;  %s972_s0 = inlined_call_operand.vmem [shape: s32[200,1], index: 0, kind: input, shape index: {}]   ;;  %s973_s1 = inlined_call_operand.vmem [shape: f32[200,128], index: 1, kind: input, shape index: {}]   ;;  %s974_s2 = inlined_call_operand.vmem [shape: f32[2,128], index: 2, kind: input, shape index: {}]   ;;  %s975_s3 = inlined_call_operand.hbm [shape: f32[200,256], index: 3, kind: output, shape index: {}]  }
   0x1   :  { %v547_v0 = vld [vmem:[%s972_s0 + $0x10] sm:$0xff]  ;;  %v552_v1 = vld [vmem:[%s972_s0] sm:$0xff]  ;;  %v557_v2 = vld [vmem:[%s972_s0 + $0x18] sm:$0xff]  ;;  %495 = vset.pattern.permute.xlu1 %v520_v3  ;;  %494 = vset.pattern.permute.xlu0 %v520_v3 }
   0x2   :  { %vm93_vm0 = vcmp.eq.s32.totalorder %v547_v0, 0  ;;  %vm91_vm1 = vcmp.eq.s32.totalorder %v552_v1, 0  ;;  %vm94_vm2 = vcmp.eq.s32.totalorder %v557_v2, 0  ;;  %v567_v4 = vld [vmem:[%s972_s0 + $0x8] sm:$0xff]  ;;  %v580_v8 = vld [vmem:[%s972_s0 + $0x20] sm:$0xff]  ;;  %v589_v11 = vld [vmem:[%s972_s0 + $0x38] sm:$0xff] }
   0x3   :  { %v118_v5 = vsel %vm93_vm0, 1, %v520_v3  ;;  %v116_v6 = vsel %vm91_vm1, 1, %v520_v3  ;;  %vm92_vm3 = vcmp.eq.s32.totalorder %v567_v4, 0  ;;  %v575_v7 = vld [vmem:[%s972_s0 + $0x28] sm:$0xff]  ;;  %v119_v9 = vsel %vm94_vm2, 1, %v520_v3  ;;  %v594_v12 = vld [vmem:[%s972_s0 + $0x30] sm:$0xff] }
   0x4   :  { %148 = vperm.xlu1 %495, %v118_v5   ;;  %142 = vperm.xlu0 %494, %v116_v6   ;;  %v117_v10 = vsel %vm92_vm3, 1, %v520_v3  ;;  %vm96_vm4 = vcmp.eq.s32.totalorder %v575_v7, 0  ;;  %vm95_vm5 = vcmp.eq.s32.totalorder %v580_v8, 0  ;;  %vm98_vm6 = vcmp.eq.s32.totalorder %v589_v11, 0  ;;  %v603_v15 = vld [vmem:[%s972_s0 + $0x48] sm:$0xff]  ;;  %v608_v16 = vld [vmem:[%s972_s0 + $0x40] sm:$0xff] }
   0x5   :  { %v121_v13 = vsel %vm96_vm4, 1, %v520_v3  ;;  %v120_v14 = vsel %vm95_vm5, 1, %v520_v3  ;;  %vm97_vm7 = vcmp.eq.s32.totalorder %v594_v12, 0  ;;  %v123_v17 = vsel %vm98_vm6, 1, %v520_v3 }
   0x6   :  { %v122_v18 = vsel %vm97_vm7, 1, %v520_v3  ;;  %vm100_vm8 = vcmp.eq.s32.totalorder %v603_v15, 0  ;;  %vm99_vm9 = vcmp.eq.s32.totalorder %v608_v16, 0 }
   0x8   :  { %151 = vperm.xlu1 %495, %v119_v9   ;;  %145 = vperm.xlu0 %494, %v117_v10  }
   0xc   :  { %157 = vperm.xlu1 %495, %v121_v13   ;;  %154 = vperm.xlu0 %494, %v120_v14  }
   0xd   :  { %8 = vsyncpa [#allocation3], 0  ;;  %v617_v19 = vld [vmem:[%s972_s0 + $0x58] sm:$0xff]  ;;  %v622_v20 = vld [vmem:[%s972_s0 + $0x50] sm:$0xff]  ;;  %v125_v21 = vsel %vm100_vm8, 1, %v520_v3  ;;  %v124_v22 = vsel %vm99_vm9, 1, %v520_v3 }
   0xe   :  { %vm102_vm10 = vcmp.eq.s32.totalorder %v617_v19, 0  ;;  %vm101_vm11 = vcmp.eq.s32.totalorder %v622_v20, 0  ;;  %v631_v23 = vld [vmem:[%s972_s0 + $0x68] sm:$0xff]  ;;  %v636_v24 = vld [vmem:[%s972_s0 + $0x60] sm:$0xff]  ;;  %v645_v27 = vld [vmem:[%s972_s0 + $0x78] sm:$0xff]  ;;  %vm270_vm8 = vcmp.eq.s32.totalorder %v552_v1, 1 }
   0xf   :  { %v127_v25 = vsel %vm102_vm10, 1, %v520_v3  ;;  %v126_v26 = vsel %vm101_vm11, 1, %v520_v3  ;;  %vm104_vm12 = vcmp.eq.s32.totalorder %v631_v23, 0  ;;  %vm103_vm13 = vcmp.eq.s32.totalorder %v636_v24, 0  ;;  %v650_v28 = vld [vmem:[%s972_s0 + $0x70] sm:$0xff]  ;;  %v659_v31 = vld [vmem:[%s972_s0 + $0x88] sm:$0xff] }
  0x10   :  { %163 = vperm.xlu1 %495, %v123_v17   ;;  %160 = vperm.xlu0 %494, %v122_v18   ;;  %v129_v29 = vsel %vm104_vm12, 1, %v520_v3  ;;  %v128_v30 = vsel %vm103_vm13, 1, %v520_v3  ;;  %vm106_vm14 = vcmp.eq.s32.totalorder %v645_v27, 0  ;;  %vm105_vm15 = vcmp.eq.s32.totalorder %v650_v28, 0  ;;  %v664_v32 = vld [vmem:[%s972_s0 + $0x80] sm:$0xff]  ;;  %v673_v35 = vld [vmem:[%s972_s0 + $0x98] sm:$0xff] }
  0x11   :  { %v131_v33 = vsel %vm106_vm14, 1, %v520_v3  ;;  %v130_v34 = vsel %vm105_vm15, 1, %v520_v3  ;;  %vm108_vm0 = vcmp.eq.s32.totalorder %v659_v31, 0  ;;  %vm107_vm1 = vcmp.eq.s32.totalorder %v664_v32, 0  ;;  %v678_v36 = vld [vmem:[%s972_s0 + $0x90] sm:$0xff]  ;;  %v687_v39 = vld [vmem:[%s972_s0 + $0xa8] sm:$0xff] }
  0x12   :  { %v133_v37 = vsel %vm108_vm0, 1, %v520_v3  ;;  %v132_v38 = vsel %vm107_vm1, 1, %v520_v3  ;;  %vm110_vm2 = vcmp.eq.s32.totalorder %v673_v35, 0  ;;  %vm109_vm3 = vcmp.eq.s32.totalorder %v678_v36, 0  ;;  %v692_v40 = vld [vmem:[%s972_s0 + $0xa0] sm:$0xff]  ;;  %v701_v43 = vld [vmem:[%s972_s0 + $0xb8] sm:$0xff] }
  0x13   :  { %v135_v41 = vsel %vm110_vm2, 1, %v520_v3  ;;  %v134_v42 = vsel %vm109_vm3, 1, %v520_v3  ;;  %vm112_vm4 = vcmp.eq.s32.totalorder %v687_v39, 0  ;;  %vm111_vm5 = vcmp.eq.s32.totalorder %v692_v40, 0  ;;  %v706_v44 = vld [vmem:[%s972_s0 + $0xb0] sm:$0xff]  ;;  %v715_v47 = vld [vmem:[%s972_s0 + $0xc0] sm:$0xff] }
  0x14   :  { %169 = vperm.xlu1 %495, %v125_v21   ;;  %166 = vperm.xlu0 %494, %v124_v22   ;;  %v137_v45 = vsel %vm112_vm4, 1, %v520_v3  ;;  %v136_v46 = vsel %vm111_vm5, 1, %v520_v3  ;;  %vm114_vm6 = vcmp.eq.s32.totalorder %v701_v43, 0  ;;  %vm113_vm7 = vcmp.eq.s32.totalorder %v706_v44, 0  ;;  %v15_v13 = vld [vmem:[%s973_s1] sm:$0xff]  ;;  %v16_v14 = vld [vmem:[%s973_s1 + $0x8] sm:$0xff] }
  0x15   :  { %v139_v48 = vsel %vm114_vm6, 1, %v520_v3  ;;  %v138_v49 = vsel %vm113_vm7, 1, %v520_v3  ;;  %vm115_vm9 = vcmp.eq.s32.totalorder %v715_v47, 0  ;;  %v295_v50 = vsel %vm270_vm8, 1, %v520_v3  ;;  %v20_v17 = vld [vmem:[%s973_s1 + $0x28] sm:$0xff]  ;;  %40 = vst [vmem:[#allocation2] sm:$0xff] %v15_v13 }
  0x16   :  { %v140_v51 = vsel %vm115_vm9, 1, %v520_v3  ;;  %vm272_vm10 = vcmp.eq.s32.totalorder %v547_v0, 1  ;;  %vm271_vm11 = vcmp.eq.s32.totalorder %v567_v4, 1  ;;  %vm274_vm12 = vcmp.eq.s32.totalorder %v580_v8, 1  ;;  %41 = vst [vmem:[#allocation2 + $0x10] sm:$0xff] %v16_v14  ;;  %v21_v18 = vld [vmem:[%s973_s1 + $0x30] sm:$0xff] }
  0x17   :  { %v297_v52 = vsel %vm272_vm10, 1, %v520_v3  ;;  %v296_v53 = vsel %vm271_vm11, 1, %v520_v3  ;;  %vm273_vm13 = vcmp.eq.s32.totalorder %v557_v2, 1  ;;  %v299_v54 = vsel %vm274_vm12, 1, %v520_v3  ;;  %45 = vst [vmem:[#allocation2 + $0x50] sm:$0xff] %v20_v17  ;;  %v24_v21 = vld [vmem:[%s973_s1 + $0x48] sm:$0xff] }
  0x18   :  { %175 = vperm.xlu1 %495, %v127_v25   ;;  %172 = vperm.xlu0 %494, %v126_v26   ;;  %v298_v55 = vsel %vm273_vm13, 1, %v520_v3  ;;  %vm276_vm14 = vcmp.eq.s32.totalorder %v594_v12, 1  ;;  %vm275_vm15 = vcmp.eq.s32.totalorder %v575_v7, 1  ;;  %vm278_vm0 = vcmp.eq.s32.totalorder %v608_v16, 1  ;;  %v18_v16 = vld [vmem:[%s973_s1 + $0x18] sm:$0xff]  ;;  %v25_v22 = vld [vmem:[%s973_s1 + $0x50] sm:$0xff] }
  0x19   :  { %v301_v56 = vsel %vm276_vm14, 1, %v520_v3  ;;  %v300_v57 = vsel %vm275_vm15, 1, %v520_v3  ;;  %vm277_vm1 = vcmp.eq.s32.totalorder %v589_v11, 1  ;;  %v303_v58 = vsel %vm278_vm0, 1, %v520_v3  ;;  %43 = vst [vmem:[#allocation2 + $0x30] sm:$0xff] %v18_v16  ;;  %46 = vst [vmem:[#allocation2 + $0x60] sm:$0xff] %v21_v18 }
  0x1a   :  { %v302_v59 = vsel %vm277_vm1, 1, %v520_v3  ;;  %vm280_vm2 = vcmp.eq.s32.totalorder %v622_v20, 1  ;;  %vm279_vm3 = vcmp.eq.s32.totalorder %v603_v15, 1  ;;  %vm282_vm4 = vcmp.eq.s32.totalorder %v636_v24, 1  ;;  %v17_v15 = vld [vmem:[%s973_s1 + $0x10] sm:$0xff]  ;;  %v23_v20 = vld [vmem:[%s973_s1 + $0x40] sm:$0xff] }
  0x1b   :  { %v305_v60 = vsel %vm280_vm2, 1, %v520_v3  ;;  %v304_v61 = vsel %vm279_vm3, 1, %v520_v3  ;;  %vm281_vm5 = vcmp.eq.s32.totalorder %v617_v19, 1  ;;  %v307_v62 = vsel %vm282_vm4, 1, %v520_v3  ;;  %42 = vst [vmem:[#allocation2 + $0x20] sm:$0xff] %v17_v15  ;;  %v22_v19 = vld [vmem:[%s973_s1 + $0x38] sm:$0xff] }
  0x1c   :  { %181 = vperm.xlu1 %495, %v129_v29   ;;  %178 = vperm.xlu0 %494, %v128_v30   ;;  %v306_v63 = vsel %vm281_vm5, 1, %v520_v3  ;;  %vm284_vm6 = vcmp.eq.s32.totalorder %v650_v28, 1  ;;  %vm283_vm7 = vcmp.eq.s32.totalorder %v631_v23, 1  ;;  %vm286_vm8 = vcmp.eq.s32.totalorder %v664_v32, 1  ;;  %v26_v23 = vld [vmem:[%s973_s1 + $0x58] sm:$0xff]  ;;  %47 = vst [vmem:[#allocation2 + $0x70] sm:$0xff] %v22_v19 }
  0x1d   :  { %v309_v0 = vsel %vm284_vm6, 1, %v520_v3  ;;  %v308_v1 = vsel %vm283_vm7, 1, %v520_v3  ;;  %vm285_vm9 = vcmp.eq.s32.totalorder %v645_v27, 1  ;;  %v311_v2 = vsel %vm286_vm8, 1, %v520_v3  ;;  %48 = vst [vmem:[#allocation2 + $0x80] sm:$0xff] %v23_v20  ;;  %v27_v24 = vld [vmem:[%s973_s1 + $0x60] sm:$0xff] }
  0x1e   :  { %v310_v4 = vsel %vm285_vm9, 1, %v520_v3  ;;  %vm288_vm10 = vcmp.eq.s32.totalorder %v678_v36, 1  ;;  %vm287_vm11 = vcmp.eq.s32.totalorder %v659_v31, 1  ;;  %vm290_vm12 = vcmp.eq.s32.totalorder %v692_v40, 1  ;;  %v28_v25 = vld [vmem:[%s973_s1 + $0x68] sm:$0xff]  ;;  %v29_v26 = vld [vmem:[%s973_s1 + $0x70] sm:$0xff] }
  0x1f   :  { %v313_v5 = vsel %vm288_vm10, 1, %v520_v3  ;;  %v312_v6 = vsel %vm287_vm11, 1, %v520_v3  ;;  %vm289_vm13 = vcmp.eq.s32.totalorder %v673_v35, 1  ;;  %v315_v7 = vsel %vm290_vm12, 1, %v520_v3  ;;  %49 = vst [vmem:[#allocation2 + $0x90] sm:$0xff] %v24_v21  ;;  %50 = vst [vmem:[#allocation2 + $0xa0] sm:$0xff] %v25_v22 }
  0x20   :  { %187 = vperm.xlu1 %495, %v131_v33   ;;  %184 = vperm.xlu0 %494, %v130_v34   ;;  %v314_v8 = vsel %vm289_vm13, 1, %v520_v3  ;;  %vm292_vm14 = vcmp.eq.s32.totalorder %v706_v44, 1  ;;  %vm291_vm15 = vcmp.eq.s32.totalorder %v687_v39, 1  ;;  %vm294_vm0 = vcmp.eq.s32.totalorder %v715_v47, 1  ;;  %51 = vst [vmem:[#allocation2 + $0xb0] sm:$0xff] %v26_v23  ;;  %v30_v27 = vld [vmem:[%s973_s1 + $0x78] sm:$0xff] }
  0x21   :  { %v317_v9 = vsel %vm292_vm14, 1, %v520_v3  ;;  %v316_v10 = vsel %vm291_vm15, 1, %v520_v3  ;;  %vm293_vm1 = vcmp.eq.s32.totalorder %v701_v43, 1  ;;  %v319_v11 = vsel %vm294_vm0, 1, %v520_v3  ;;  %v31_v28 = vld [vmem:[%s973_s1 + $0x80] sm:$0xff]  ;;  %v32_v29 = vld [vmem:[%s973_s1 + $0x88] sm:$0xff] }
  0x22   :  { %v318_v12 = vsel %vm293_vm1, 1, %v520_v3  ;;  %v19_v3 = vld [vmem:[%s973_s1 + $0x20] sm:$0xff]  ;;  %52 = vst [vmem:[#allocation2 + $0xc0] sm:$0xff] %v27_v24  ;;  %53 = vst [vmem:[#allocation2 + $0xd0] sm:$0xff] %v28_v25  ;;  %v33_v30 = vld [vmem:[%s973_s1 + $0x90] sm:$0xff] }
  0x23   :  { %44 = vst [vmem:[#allocation2 + $0x40] sm:$0xff] %v19_v3  ;;  %54 = vst [vmem:[#allocation2 + $0xe0] sm:$0xff] %v29_v26  ;;  %v34_v31 = vld [vmem:[%s973_s1 + $0x98] sm:$0xff]  ;;  %v35_v32 = vld [vmem:[%s973_s1 + $0xa0] sm:$0xff] }
  0x24   :  { %193 = vperm.xlu1 %495, %v133_v37   ;;  %190 = vperm.xlu0 %494, %v132_v38   ;;  %55 = vst [vmem:[#allocation2 + $0xf0] sm:$0xff] %v30_v27  ;;  %56 = vst [vmem:[#allocation2 + $0x100] sm:$0xff] %v31_v28  ;;  %v36_v33 = vld [vmem:[%s973_s1 + $0xa8] sm:$0xff]  ;;  %v37_v34 = vld [vmem:[%s973_s1 + $0xb0] sm:$0xff] }
  0x25   :  { %57 = vst [vmem:[#allocation2 + $0x110] sm:$0xff] %v32_v29  ;;  %v38_v35 = vld [vmem:[%s973_s1 + $0xb8] sm:$0xff]  ;;  %58 = vst [vmem:[#allocation2 + $0x120] sm:$0xff] %v33_v30  ;;  %v39_v36 = vld [vmem:[%s973_s1 + $0xc0] sm:$0xff] }
  0x26   :  { %59 = vst [vmem:[#allocation2 + $0x130] sm:$0xff] %v34_v31  ;;  %60 = vst [vmem:[#allocation2 + $0x140] sm:$0xff] %v35_v32 }
  0x27   :  { %61 = vst [vmem:[#allocation2 + $0x150] sm:$0xff] %v36_v33  ;;  %62 = vst [vmem:[#allocation2 + $0x160] sm:$0xff] %v37_v34 }
  0x28   :  { %199 = vperm.xlu1 %495, %v135_v41   ;;  %196 = vperm.xlu0 %494, %v134_v42   ;;  %63 = vst [vmem:[#allocation2 + $0x170] sm:$0xff] %v38_v35  ;;  %64 = vst [vmem:[#allocation2 + $0x180] sm:$0xff] %v39_v36 }
  0x2c   :  { %205 = vperm.xlu1 %495, %v137_v45   ;;  %202 = vperm.xlu0 %494, %v136_v46  }
  0x30   :  { %211 = vperm.xlu1 %495, %v139_v48   ;;  %208 = vperm.xlu0 %494, %v138_v49  }
  0x34   :  { %321 = vperm.xlu1 %495, %v295_v50   ;;  %214 = vperm.xlu0 %494, %v140_v51  }
  0x38   :  { %327 = vperm.xlu1 %495, %v297_v52   ;;  %324 = vperm.xlu0 %494, %v296_v53  }
  0x3c   :  { %333 = vperm.xlu1 %495, %v299_v54   ;;  %330 = vperm.xlu0 %494, %v298_v55   ;;  %v241_v55 = vlaneseq }
  0x40   :  { %339 = vperm.xlu1 %495, %v301_v56   ;;  %336 = vperm.xlu0 %494, %v300_v57  }
  0x44   :  { %345 = vperm.xlu1 %495, %v303_v58   ;;  %342 = vperm.xlu0 %494, %v302_v59   ;;  %v242_v58 = vshrl.u32 %v241_v55, 7 }
  0x48   :  { %351 = vperm.xlu1 %495, %v305_v60   ;;  %348 = vperm.xlu0 %494, %v304_v61   ;;  %v243_v61 = vsub.s32 0, %v242_v58 }
  0x4c   :  { %357 = vperm.xlu1 %495, %v307_v62   ;;  %354 = vperm.xlu0 %494, %v306_v63   ;;  %v90_v62 = vld [vmem:[%s974_s2] sm:$0x3]  ;;  %v422_v63 = vsub.s32 1, %v242_v58  ;;  %s521_s2 = smov [#allocation2]  }
  0x4d   :  { %s479_s30 = sshll.u32 %s521_s2, 4  ;;  %s480_s30 = int_to_ptr.vmem [resolvable:$true] %s479_s30 }
  0x4e   :  { %s496_s4 = scalar_lea.vmem %s480_s30, 6400  ;;  %p501_p1 = scmp.lt.s32.totalorder %s480_s30, %s480_s30 }
  0x4f   :  { %p497_p0 = scmp.ne.s32.totalorder %s480_s30, %s496_s4  ;;  %p502_p2 = scmp.lt.s32.totalorder %s496_s4, %s496_s4 }
  0x50   :  { %363 = vperm.xlu1 %495, %v309_v0   ;;  %360 = vperm.xlu0 %494, %v308_v1  }
  0x51   :  { %p503_p3 = por %p502_p2, %p501_p1 }
  0x53   :  { %p504_p4 = pnand %p503_p3, %p497_p0 }
  0x54   :  { %369 = vperm.xlu1 %495, %v311_v2   ;;  %366 = vperm.xlu0 %494, %v310_v4   ;;  %v885_v2 = vrot.slane %v90_v62, %v243_v61  ;;  %v887_v4 = vrot.slane %v90_v62, %v422_v63 }
  0x58   :  { %375 = vperm.xlu1 %495, %v313_v5   ;;  %372 = vperm.xlu0 %494, %v312_v6  }
  0x5c   :  { %381 = vperm.xlu1 %495, %v315_v7   ;;  %378 = vperm.xlu0 %494, %v314_v8  }
  0x60   :  { %387 = vperm.xlu1 %495, %v317_v9   ;;  %384 = vperm.xlu0 %494, %v316_v10  }
  0x64   :  { %393 = vperm.xlu1 %495, %v319_v11   ;;  %390 = vperm.xlu0 %494, %v318_v12  }
  0x83   :  { %v149_v37 = vpop.permute.xlu1 %148  ;;  %v143_v38 = vpop.permute.xlu0 %142 }
  0x84   :  { %vm216_vm2 = vcmp.eq.s32.totalorder %v143_v38, 1  ;;  %vm218_vm4 = vcmp.eq.s32.totalorder %v149_v37, 1 }
  0x85   :  { %v245_v7 = vsel %vm216_vm2, %v885_v2, 0.0  ;;  %v247_v11 = vsel %vm218_vm4, %v885_v2, 0.0 }
  0x87   :  { %v152_v39 = vpop.permute.xlu1 %151  ;;  %v146_v40 = vpop.permute.xlu0 %145 }
  0x88   :  { %vm217_vm5 = vcmp.eq.s32.totalorder %v146_v40, 1  ;;  %vm219_vm8 = vcmp.eq.s32.totalorder %v152_v39, 1 }
  0x89   :  { %v246_v12 = vsel %vm217_vm5, %v885_v2, 0.0  ;;  %v248_v3 = vsel %vm219_vm8, %v885_v2, 0.0 }
  0x8b   :  { %v846_v41 = vpop.permute.xlu1 %157  ;;  %v155_v42 = vpop.permute.xlu0 %154 }
  0x8c   :  { %vm220_vm9 = vcmp.eq.s32.totalorder %v155_v42, 1  ;;  %vm221_vm12 = vcmp.eq.s32.totalorder %v846_v41, 1 }
  0x8d   :  { %v249_v17 = vsel %vm220_vm9, %v885_v2, 0.0  ;;  %v250_v22 = vsel %vm221_vm12, %v885_v2, 0.0 }
  0x8f   :  { %v848_v43 = vpop.permute.xlu1 %163  ;;  %v161_v44 = vpop.permute.xlu0 %160 }
  0x90   :  { %vm222_vm13 = vcmp.eq.s32.totalorder %v161_v44, 1  ;;  %vm223_vm0 = vcmp.eq.s32.totalorder %v848_v43, 1 }
  0x91   :  { %v251_v23 = vsel %vm222_vm13, %v885_v2, 0.0  ;;  %v252_v28 = vsel %vm223_vm0, %v885_v2, 0.0 }
  0x93   :  { %v850_v45 = vpop.permute.xlu1 %169  ;;  %v852_v46 = vpop.permute.xlu0 %166 }
  0x94   :  { %vm224_vm1 = vcmp.eq.s32.totalorder %v852_v46, 1  ;;  %vm225_vm4 = vcmp.eq.s32.totalorder %v850_v45, 1 }
  0x95   :  { %v253_v29 = vsel %vm224_vm1, %v885_v2, 0.0  ;;  %v254_v34 = vsel %vm225_vm4, %v885_v2, 0.0 }
  0x97   :  { %v854_v47 = vpop.permute.xlu1 %175  ;;  %v856_v48 = vpop.permute.xlu0 %172 }
  0x98   :  { %vm226_vm5 = vcmp.eq.s32.totalorder %v856_v48, 1  ;;  %vm227_vm8 = vcmp.eq.s32.totalorder %v854_v47, 1 }
  0x99   :  { %v255_v35 = vsel %vm226_vm5, %v885_v2, 0.0  ;;  %v256_v40 = vsel %vm227_vm8, %v885_v2, 0.0 }
  0x9b   :  { %v858_v49 = vpop.permute.xlu1 %181  ;;  %v860_v50 = vpop.permute.xlu0 %178 }
  0x9c   :  { %vm228_vm9 = vcmp.eq.s32.totalorder %v860_v50, 1  ;;  %vm229_vm12 = vcmp.eq.s32.totalorder %v858_v49, 1 }
  0x9d   :  { %v257_v41 = vsel %vm228_vm9, %v885_v2, 0.0  ;;  %v258_v46 = vsel %vm229_vm12, %v885_v2, 0.0 }
  0x9f   :  { %v862_v51 = vpop.permute.xlu1 %187  ;;  %v864_v52 = vpop.permute.xlu0 %184 }
  0xa0   :  { %vm230_vm13 = vcmp.eq.s32.totalorder %v864_v52, 1  ;;  %vm231_vm0 = vcmp.eq.s32.totalorder %v862_v51, 1 }
  0xa1   :  { %v259_v47 = vsel %vm230_vm13, %v885_v2, 0.0  ;;  %v260_v55 = vsel %vm231_vm0, %v885_v2, 0.0 }
  0xa3   :  { %v866_v53 = vpop.permute.xlu1 %193  ;;  %v868_v54 = vpop.permute.xlu0 %190 }
  0xa4   :  { %vm232_vm1 = vcmp.eq.s32.totalorder %v868_v54, 1  ;;  %vm233_vm4 = vcmp.eq.s32.totalorder %v866_v53, 1 }
  0xa5   :  { %v261_v58 = vsel %vm232_vm1, %v885_v2, 0.0  ;;  %v262_v63 = vsel %vm233_vm4, %v885_v2, 0.0 }
  0xa7   :  { %v870_v56 = vpop.permute.xlu1 %199  ;;  %v872_v57 = vpop.permute.xlu0 %196 }
  0xa8   :  { %vm234_vm5 = vcmp.eq.s32.totalorder %v872_v57, 1  ;;  %vm235_vm8 = vcmp.eq.s32.totalorder %v870_v56, 1 }
  0xab   :  { %v874_v59 = vpop.permute.xlu1 %205  ;;  %v876_v60 = vpop.permute.xlu0 %202 }
  0xac   :  { %vm236_vm9 = vcmp.eq.s32.totalorder %v876_v60, 1  ;;  %vm237_vm12 = vcmp.eq.s32.totalorder %v874_v59, 1 }
  0xaf   :  { %v881_v0 = vpop.permute.xlu1 %211  ;;  %v883_v1 = vpop.permute.xlu0 %208 }
  0xb0   :  { %vm238_vm13 = vcmp.eq.s32.totalorder %v883_v1, 1  ;;  %vm239_vm0 = vcmp.eq.s32.totalorder %v881_v0, 1 }
  0xb3   :  { %v322_v5 = vpop.permute.xlu1 %321  ;;  %v889_v6 = vpop.permute.xlu0 %214 }
  0xb4   :  { %vm395_vm3 = vcmp.eq.s32.totalorder %v322_v5, 1  ;;  %v263_v5 = vsel %vm234_vm5, %v885_v2, 0.0  ;;  %vm240_vm1 = vcmp.eq.s32.totalorder %v889_v6, 1 }
  0xb5   :  { %v424_v8 = vsel %vm395_vm3, %v887_v4, %v245_v7 }
  0xb6   :  { %449 = vst [vmem:[#allocation2 + $0x8] sm:$0xff] %v424_v8 }
  0xb7   :  { %v328_v9 = vpop.permute.xlu1 %327  ;;  %v325_v10 = vpop.permute.xlu0 %324 }
  0xb8   :  { %vm397_vm6 = vcmp.eq.s32.totalorder %v328_v9, 1  ;;  %vm396_vm7 = vcmp.eq.s32.totalorder %v325_v10, 1  ;;  %v264_v9 = vsel %vm235_vm8, %v885_v2, 0.0  ;;  %v265_v10 = vsel %vm236_vm9, %v885_v2, 0.0 }
  0xb9   :  { %v426_v13 = vsel %vm397_vm6, %v887_v4, %v247_v11  ;;  %v425_v14 = vsel %vm396_vm7, %v887_v4, %v246_v12 }
  0xba   :  { %451 = vst [vmem:[#allocation2 + $0x28] sm:$0xff] %v426_v13  ;;  %450 = vst [vmem:[#allocation2 + $0x18] sm:$0xff] %v425_v14  ;;  %v266_v13 = vsel %vm237_vm12, %v885_v2, 0.0  ;;  %v267_v14 = vsel %vm238_vm13, %v885_v2, 0.0 }
  0xbb   :  { %v334_v15 = vpop.permute.xlu1 %333  ;;  %v331_v16 = vpop.permute.xlu0 %330 }
  0xbc   :  { %vm399_vm10 = vcmp.eq.s32.totalorder %v334_v15, 1  ;;  %vm398_vm11 = vcmp.eq.s32.totalorder %v331_v16, 1 }
  0xbd   :  { %v428_v18 = vsel %vm399_vm10, %v887_v4, %v249_v17  ;;  %v427_v19 = vsel %vm398_vm11, %v887_v4, %v248_v3  ;;  %v268_v3 = vsel %vm239_vm0, %v885_v2, 0.0  ;;  %v269_v17 = vsel %vm240_vm1, %v885_v2, 0.0 }
  0xbe   :  { %453 = vst [vmem:[#allocation2 + $0x48] sm:$0xff] %v428_v18  ;;  %452 = vst [vmem:[#allocation2 + $0x38] sm:$0xff] %v427_v19 }
  0xbf   :  { %v340_v20 = vpop.permute.xlu1 %339  ;;  %v337_v21 = vpop.permute.xlu0 %336 }
  0xc0   :  { %vm401_vm14 = vcmp.eq.s32.totalorder %v340_v20, 1  ;;  %vm400_vm15 = vcmp.eq.s32.totalorder %v337_v21, 1 }
  0xc1   :  { %v430_v24 = vsel %vm401_vm14, %v887_v4, %v251_v23  ;;  %v429_v25 = vsel %vm400_vm15, %v887_v4, %v250_v22 }
  0xc2   :  { %455 = vst [vmem:[#allocation2 + $0x68] sm:$0xff] %v430_v24  ;;  %454 = vst [vmem:[#allocation2 + $0x58] sm:$0xff] %v429_v25 }
  0xc3   :  { %v346_v26 = vpop.permute.xlu1 %345  ;;  %v343_v27 = vpop.permute.xlu0 %342 }
  0xc4   :  { %vm403_vm2 = vcmp.eq.s32.totalorder %v346_v26, 1  ;;  %vm402_vm3 = vcmp.eq.s32.totalorder %v343_v27, 1 }
  0xc5   :  { %v432_v30 = vsel %vm403_vm2, %v887_v4, %v253_v29  ;;  %v431_v31 = vsel %vm402_vm3, %v887_v4, %v252_v28 }
  0xc6   :  { %457 = vst [vmem:[#allocation2 + $0x88] sm:$0xff] %v432_v30  ;;  %456 = vst [vmem:[#allocation2 + $0x78] sm:$0xff] %v431_v31 }
  0xc7   :  { %v352_v32 = vpop.permute.xlu1 %351  ;;  %v349_v33 = vpop.permute.xlu0 %348 }
  0xc8   :  { %vm405_vm6 = vcmp.eq.s32.totalorder %v352_v32, 1  ;;  %vm404_vm7 = vcmp.eq.s32.totalorder %v349_v33, 1 }
  0xc9   :  { %v434_v36 = vsel %vm405_vm6, %v887_v4, %v255_v35  ;;  %v433_v37 = vsel %vm404_vm7, %v887_v4, %v254_v34 }
  0xca   :  { %459 = vst [vmem:[#allocation2 + $0xa8] sm:$0xff] %v434_v36  ;;  %458 = vst [vmem:[#allocation2 + $0x98] sm:$0xff] %v433_v37 }
  0xcb   :  { %v358_v38 = vpop.permute.xlu1 %357  ;;  %v355_v39 = vpop.permute.xlu0 %354 }
  0xcc   :  { %vm407_vm10 = vcmp.eq.s32.totalorder %v358_v38, 1  ;;  %vm406_vm11 = vcmp.eq.s32.totalorder %v355_v39, 1 }
  0xcd   :  { %v436_v42 = vsel %vm407_vm10, %v887_v4, %v257_v41  ;;  %v435_v43 = vsel %vm406_vm11, %v887_v4, %v256_v40 }
  0xce   :  { %461 = vst [vmem:[#allocation2 + $0xc8] sm:$0xff] %v436_v42  ;;  %460 = vst [vmem:[#allocation2 + $0xb8] sm:$0xff] %v435_v43 }
  0xcf   :  { %v364_v44 = vpop.permute.xlu1 %363  ;;  %v361_v45 = vpop.permute.xlu0 %360 }
  0xd0   :  { %vm409_vm14 = vcmp.eq.s32.totalorder %v364_v44, 1  ;;  %vm408_vm15 = vcmp.eq.s32.totalorder %v361_v45, 1 }
  0xd1   :  { %v438_v48 = vsel %vm409_vm14, %v887_v4, %v259_v47  ;;  %v437_v49 = vsel %vm408_vm15, %v887_v4, %v258_v46 }
  0xd2   :  { %463 = vst [vmem:[#allocation2 + $0xe8] sm:$0xff] %v438_v48  ;;  %462 = vst [vmem:[#allocation2 + $0xd8] sm:$0xff] %v437_v49 }
  0xd3   :  { %v370_v50 = vpop.permute.xlu1 %369  ;;  %v367_v52 = vpop.permute.xlu0 %366 }
  0xd4   :  { %vm411_vm2 = vcmp.eq.s32.totalorder %v370_v50, 1  ;;  %vm410_vm3 = vcmp.eq.s32.totalorder %v367_v52, 1 }
  0xd5   :  { %v440_v51 = vsel %vm411_vm2, %v887_v4, %v261_v58  ;;  %v439_v54 = vsel %vm410_vm3, %v887_v4, %v260_v55 }
  0xd6   :  { %465 = vst [vmem:[#allocation2 + $0x108] sm:$0xff] %v440_v51  ;;  %464 = vst [vmem:[#allocation2 + $0xf8] sm:$0xff] %v439_v54 }
  0xd7   :  { %v376_v61 = vpop.permute.xlu1 %375  ;;  %v373_v62 = vpop.permute.xlu0 %372 }
  0xd8   :  { %vm413_vm6 = vcmp.eq.s32.totalorder %v376_v61, 1  ;;  %vm412_vm7 = vcmp.eq.s32.totalorder %v373_v62, 1 }
  0xd9   :  { %v442_v53 = vsel %vm413_vm6, %v887_v4, %v263_v5  ;;  %v441_v57 = vsel %vm412_vm7, %v887_v4, %v262_v63 }
  0xda   :  { %467 = vst [vmem:[#allocation2 + $0x128] sm:$0xff] %v442_v53  ;;  %466 = vst [vmem:[#allocation2 + $0x118] sm:$0xff] %v441_v57 }
  0xdb   :  { %v382_v7 = vpop.permute.xlu1 %381  ;;  %v379_v8 = vpop.permute.xlu0 %378 }
  0xdc   :  { %vm415_vm10 = vcmp.eq.s32.totalorder %v382_v7, 1  ;;  %vm414_vm11 = vcmp.eq.s32.totalorder %v379_v8, 1 }
  0xdd   :  { %v444_v56 = vsel %vm415_vm10, %v887_v4, %v265_v10  ;;  %v443_v60 = vsel %vm414_vm11, %v887_v4, %v264_v9 }
  0xde   :  { %469 = vst [vmem:[#allocation2 + $0x148] sm:$0xff] %v444_v56  ;;  %468 = vst [vmem:[#allocation2 + $0x138] sm:$0xff] %v443_v60 }
  0xdf   :  { %v388_v11 = vpop.permute.xlu1 %387  ;;  %v385_v12 = vpop.permute.xlu0 %384 }
  0xe0   :  { %vm417_vm14 = vcmp.eq.s32.totalorder %v388_v11, 1  ;;  %vm416_vm15 = vcmp.eq.s32.totalorder %v385_v12, 1 }
  0xe1   :  { %v446_v59 = vsel %vm417_vm14, %v887_v4, %v267_v14  ;;  %v445_v1 = vsel %vm416_vm15, %v887_v4, %v266_v13 }
  0xe2   :  { %471 = vst [vmem:[#allocation2 + $0x168] sm:$0xff] %v446_v59  ;;  %470 = vst [vmem:[#allocation2 + $0x158] sm:$0xff] %v445_v1 }
  0xe3   :  { %v394_v15 = vpop.permute.xlu1 %393  ;;  %v391_v16 = vpop.permute.xlu0 %390 }
  0xe4   :  { %vm419_vm2 = vcmp.eq.s32.totalorder %v394_v15, 1  ;;  %vm418_vm3 = vcmp.eq.s32.totalorder %v391_v16, 1 }
  0xe5   :  { %v448_v18 = vsel %vm419_vm2, %v887_v4, %v269_v17  ;;  %v447_v0 = vsel %vm418_vm3, %v887_v4, %v268_v3 }
  0xe6   :  { %473 = vst [vmem:[#allocation2 + $0x188] sm:$0xff] %v448_v18  ;;  %472 = vst [vmem:[#allocation2 + $0x178] sm:$0xff] %v447_v0 }
  0xe7   :  { %507 = shalt.err (!%p504_p4)
}
  0xe8   :  { %s508_s7 = scalar_lea.hbm %s975_s3, 6400 }
  0xe9   :  { %p509_p5 = scmp.ne.s32.totalorder %s975_s3, %s508_s7  ;;  %p512_p6 = scmp.lt.u32.totalorder %s508_s7, %s975_s3 }
  0xeb   :  { %p514_p7 = pnand %p512_p6, %p509_p5 }
  0xed   :  { %517 = shalt.err (!%p514_p7)
}
  0xee   :  { %s522_s11 = smov 256   ;;  %s523_s12 = smov 16  }
  0xef   :  { %485 = dma.vmem_to_hbm [thread:$0]  %s480_s30, 6400, %s975_s3, [#allocation3], %s522_s11, %s522_s11, %s523_s12  }
  0xf0   :  { %518 = dma.done.wait [#allocation3], 6400  }
  0xf1   :  { %519 = vsyncadd [#allocation3], 4294960896 }
  0xf2   :  { %489 = vsyncpa [#allocation3], 1 }

</bundles_post_ra>
